<compile_context>
chip_gen: v7x
topology: tpu7x:2x2x1
jax: 0.10.0
libtpu: 0.0.40
codegen_flags: <defaults>
</compile_context>

<pallas_src>
import functools

import jax
import jax.numpy as jnp
from jax.experimental import pallas as pl
from jax.experimental.pallas import tpu as pltpu

_LANE = 128


# ----------------------------------------------------------------------------
# Kernel: one batch tile, all ensemble members fused.
# ----------------------------------------------------------------------------
def _fused_ensemble_mlp_kernel(x_ref, w1_ref, b1_ref, w2_ref, b2_ref, o_ref):
    # Layer 1: [tb, Fin] @ [Fin, E*2H] -> f32 accum, f32 bias, tanh.
    h = jnp.tanh(
        jnp.dot(x_ref[...], w1_ref[...], preferred_element_type=jnp.float32)
        + b1_ref[...]
    )
    # Layer 2 (block-diagonal across members, prior_scale pre-folded):
    # [tb, E*2H] @ [E*2H, E*Fout_pad] -> f32 accum, f32 bias, unmasked store.
    o_ref[...] = (
        jnp.dot(h.astype(w2_ref.dtype), w2_ref[...],
                preferred_element_type=jnp.float32)
        + b2_ref[...]
    )


# ----------------------------------------------------------------------------
# One-time weight preparation (outside the per-step hot path).
# ----------------------------------------------------------------------------
def prepare_fused_params(params, *, prior_scale, weight_dtype=jnp.bfloat16):
    """Fold the frozen prior net + prior_scale into fused ensemble weights.

    Returns ((W1, B1, W2, B2), E, Fout, Fout_pad) where
      W1: [Fin, E*2H]           (bf16)   member-major hidden columns
      B1: [1,   E*2H]           (f32)
      W2: [E*2H, E*Fout_pad]    (bf16)   block-diagonal, prior_scale folded
      B2: [1,    E*Fout_pad]    (f32)
    """
    w1, b1, w2, b2, pw1, pb1, pw2, pb2 = params        # each has leading E dim
    E, Fin, H = w1.shape
    Fout = w2.shape[-1]
    Fout_pad = ((Fout + _LANE - 1) // _LANE) * _LANE

    # ---- Layer 1: concat main/prior per member, then concat members. ----
    w1cat = jnp.concatenate([w1, pw1], axis=-1)                 # [E, Fin, 2H]
    b1cat = jnp.concatenate([b1, pb1], axis=-1)                 # [E, 1,  2H]
    W1 = jnp.transpose(w1cat, (1, 0, 2)).reshape(Fin, E * 2 * H)
    B1 = b1cat.reshape(1, E * 2 * H).astype(jnp.float32)

    # ---- Layer 2: per-member stack along contraction, block-diag across E. --
    scale = jnp.float32(prior_scale)
    w2stack = jnp.concatenate([w2, scale * pw2], axis=1)        # [E, 2H, Fout]
    b2comb = b2 + scale * pb2                                   # [E, 1,  Fout]

    pad = Fout_pad - Fout
    w2stack = jnp.pad(w2stack, ((0, 0), (0, 0), (0, pad)))      # [E, 2H, Fp]
    b2comb = jnp.pad(b2comb, ((0, 0), (0, 0), (0, pad)))        # [E, 1,  Fp]

    eye = jnp.eye(E, dtype=w2stack.dtype)
    # W2[e*2H + h, g*Fp + f] = w2stack[e, h, f] * (e == g)
    W2 = jnp.einsum('ehf,eg->ehgf', w2stack, eye).reshape(
        E * 2 * H, E * Fout_pad)
    B2 = b2comb.reshape(1, E * Fout_pad).astype(jnp.float32)

    W1 = W1.astype(weight_dtype)
    W2 = W2.astype(weight_dtype)
    return (W1, B1, W2, B2), E, Fout, Fout_pad


# ----------------------------------------------------------------------------
# Forward wrapper.
# ----------------------------------------------------------------------------
def base_forward(obs, action, fused_params, *, batch_tile=1024):
    """obs [B, obs_size], action [B, action_size] ->
       padded slab [B, E*Fout_pad] f32 (member-major columns).

    Keep consuming the padded slab at production batch sizes; use
    `unpack_output` only where the [E, B, Fout] view is actually needed.
    """
    W1, B1, W2, B2 = fused_params
    Fin, E2H = W1.shape
    Ncols = W2.shape[1]

    x = jnp.concatenate(
        [obs.astype(jnp.float32), action.astype(jnp.float32)], axis=-1)
    x = x.astype(W1.dtype)
    B = x.shape[0]
    assert x.shape[1] == Fin, (x.shape, Fin)

    # Batch tiling: single full-extent tile for small B; capped tile (multiple
    # of the MXU height, well under v7x's 64 MiB VMEM) for large B.
    if B <= batch_tile:
        tb, Bp = B, B
    else:
        tb = batch_tile
        Bp = pl.cdiv(B, tb) * tb
        x = jnp.pad(x, ((0, Bp - B), (0, 0)))

    out = pl.pallas_call(
        _fused_ensemble_mlp_kernel,
        out_shape=jax.ShapeDtypeStruct((Bp, Ncols), jnp.float32),
        grid=(Bp // tb,),
        in_specs=[
            pl.BlockSpec((tb, Fin), lambda i: (i, 0)),       # x tile
            pl.BlockSpec((Fin, E2H), lambda i: (0, 0)),      # W1 (resident)
            pl.BlockSpec((1, E2H), lambda i: (0, 0)),        # B1
            pl.BlockSpec((E2H, Ncols), lambda i: (0, 0)),    # W2 (resident)
            pl.BlockSpec((1, Ncols), lambda i: (0, 0)),      # B2
        ],
        out_specs=pl.BlockSpec((tb, Ncols), lambda i: (i, 0)),
        compiler_params=pltpu.CompilerParams(
            dimension_semantics=("parallel",)),
    )(x, W1, B1, W2, B2)

    return out[:B]


def unpack_output(slab, E, Fout, Fout_pad):
    """[B, E*Fout_pad] padded slab -> [E, B, Fout] (test / consumer view)."""
    B = slab.shape[0]
    return jnp.transpose(
        slab.reshape(B, E, Fout_pad)[:, :, :Fout], (1, 0, 2))


# ----------------------------------------------------------------------------
# Parameter init (synthetic, matches an nn.Linear-style ensemble).
# ----------------------------------------------------------------------------
def init_params(key, num_members, in_size, hidden, out_size):
    ks = jax.random.split(key, 8)
    s1 = 1.0 / jnp.sqrt(jnp.float32(in_size))
    s2 = 1.0 / jnp.sqrt(jnp.float32(hidden))
    uni = lambda k, shape, s: jax.random.uniform(k, shape, jnp.float32, -s, s)
    w1 = uni(ks[0], (num_members, in_size, hidden), s1)
    b1 = uni(ks[1], (num_members, 1, hidden), s1)
    w2 = uni(ks[2], (num_members, hidden, out_size), s2)
    b2 = uni(ks[3], (num_members, 1, out_size), s2)
    pw1 = uni(ks[4], (num_members, in_size, hidden), s1)
    pb1 = uni(ks[5], (num_members, 1, hidden), s1)
    pw2 = uni(ks[6], (num_members, hidden, out_size), s2)
    pb2 = uni(ks[7], (num_members, 1, out_size), s2)
    return (w1, b1, w2, b2, pw1, pb1, pw2, pb2)


if __name__ == "__main__":
    # Module config (synthetic, deterministic):
    obs_size = 24
    action_size = 8
    hidden = 32
    prior_scale = 1.5          # asserted >= 0 in Base.__init__
    batch = 8
    ensemble = 4

    key = jax.random.PRNGKey(0)
    k_obs, k_act, k_par = jax.random.split(key, 3)

    obs = jax.random.normal(k_obs, (batch, obs_size), jnp.float32)
    action = jax.random.normal(k_act, (batch, action_size), jnp.float32)
    params = init_params(k_par, ensemble, obs_size + action_size, hidden,
                         obs_size + 1)

    fused, E, Fout, Fout_pad = prepare_fused_params(
        params, prior_scale=prior_scale, weight_dtype=jnp.bfloat16)

    slab = base_forward(obs, action, fused)
    slab = jax.block_until_ready(slab)
    out = unpack_output(slab, E, Fout, Fout_pad)

    # Pure-JAX f32 reference of the unfused randomized-prior ensemble forward.
    w1, b1, w2, b2, pw1, pb1, pw2, pb2 = params
    x = jnp.concatenate([obs, action], axis=-1)
    refs = []
    for e in range(ensemble):
        main = jnp.tanh(x @ w1[e] + b1[e]) @ w2[e] + b2[e]
        prior = jnp.tanh(x @ pw1[e] + pb1[e]) @ pw2[e] + pb2[e]
        refs.append(main + prior_scale * prior)
    ref = jnp.stack(refs, axis=0)

    assert out.shape == (ensemble, batch, obs_size + 1), out.shape
    # bf16 inputs/weights with f32 accumulation: loosened tolerance.
    assert jnp.allclose(out, ref, atol=7.5e-2, rtol=5e-2), (
        float(jnp.max(jnp.abs(out - ref))))

    print("KERNEL_OK")
</pallas_src>

<mosaic_0001>
module attributes {stable_mosaic.version = 11 : i64} {
  func.func @_fused_ensemble_mlp_kernel(%arg0: i32, %arg1: memref<8x32xbf16, #tpu.memory_space<vmem>>, %arg2: memref<32x256xbf16, #tpu.memory_space<vmem>>, %arg3: memref<1x256xf32, #tpu.memory_space<vmem>>, %arg4: memref<256x512xbf16, #tpu.memory_space<vmem>>, %arg5: memref<1x512xf32, #tpu.memory_space<vmem>>, %arg6: memref<8x512xf32, #tpu.memory_space<vmem>>) attributes {dimension_semantics = [#tpu.dimension_semantics<parallel>], iteration_bounds = array<i64: 1>, scalar_prefetch = 0 : i64, scratch_operands = 0 : i64, tpu.core_type = #tpu.core_type<tc>, window_params = [{transform_indices = @transform_0, window_bounds = array<i64: 8, 32>}, {pipeline_mode = #tpu.pipeline_mode<synchronous>, transform_indices = @transform_1, window_bounds = array<i64: 32, 256>}, {pipeline_mode = #tpu.pipeline_mode<synchronous>, transform_indices = @transform_2, window_bounds = array<i64: 1, 256>}, {pipeline_mode = #tpu.pipeline_mode<synchronous>, transform_indices = @transform_3, window_bounds = array<i64: 256, 512>}, {pipeline_mode = #tpu.pipeline_mode<synchronous>, transform_indices = @transform_4, window_bounds = array<i64: 1, 512>}, {transform_indices = @transform_5, window_bounds = array<i64: 8, 512>}]} {
    %c0 = arith.constant 0 : index
    %c0_0 = arith.constant 0 : index
    %0 = vector.load %arg1[%c0, %c0_0] : memref<8x32xbf16, #tpu.memory_space<vmem>>, vector<8x32xbf16>
    %c0_1 = arith.constant 0 : index
    %c0_2 = arith.constant 0 : index
    %1 = vector.load %arg2[%c0_1, %c0_2] : memref<32x256xbf16, #tpu.memory_space<vmem>>, vector<32x256xbf16>
    %cst = arith.constant dense<0.000000e+00> : vector<8x256xf32>
    %2 = tpu.matmul %0, %1, %cst {dimension_numbers = #tpu.dot_dimension_numbers<[1], [0], [0], [1], [0, 0, 1, 1], [], []>} : vector<8x32xbf16>, vector<32x256xbf16>, vector<8x256xf32> -> vector<8x256xf32>
    %c0_3 = arith.constant 0 : index
    %c0_4 = arith.constant 0 : index
    %3 = vector.load %arg3[%c0_3, %c0_4] : memref<1x256xf32, #tpu.memory_space<vmem>>, vector<1x256xf32>
    %4 = vector.broadcast %3 : vector<1x256xf32> to vector<8x256xf32>
    %5 = arith.addf %2, %4 : vector<8x256xf32>
    %6 = math.tanh %5 : vector<8x256xf32>
    %7 = arith.truncf %6 : vector<8x256xf32> to vector<8x256xbf16>
    %c0_5 = arith.constant 0 : index
    %c0_6 = arith.constant 0 : index
    %8 = vector.load %arg4[%c0_5, %c0_6] : memref<256x512xbf16, #tpu.memory_space<vmem>>, vector<256x512xbf16>
    %cst_7 = arith.constant dense<0.000000e+00> : vector<8x512xf32>
    %9 = tpu.matmul %7, %8, %cst_7 {dimension_numbers = #tpu.dot_dimension_numbers<[1], [0], [0], [1], [0, 0, 1, 1], [], []>} : vector<8x256xbf16>, vector<256x512xbf16>, vector<8x512xf32> -> vector<8x512xf32>
    %c0_8 = arith.constant 0 : index
    %c0_9 = arith.constant 0 : index
    %10 = vector.load %arg5[%c0_8, %c0_9] : memref<1x512xf32, #tpu.memory_space<vmem>>, vector<1x512xf32>
    %11 = vector.broadcast %10 : vector<1x512xf32> to vector<8x512xf32>
    %12 = arith.addf %9, %11 : vector<8x512xf32>
    %c0_10 = arith.constant 0 : index
    %c0_11 = arith.constant 0 : index
    %13 = vector.load %arg6[%c0_10, %c0_11] : memref<8x512xf32, #tpu.memory_space<vmem>>, vector<8x512xf32>
    tpu.vector_store %arg6[%c0_10, %c0_11], %12 {strides = array<i32>} : memref<8x512xf32, #tpu.memory_space<vmem>>, vector<8x512xf32>,
    return
  }
  func.func @transform_0(%arg0: i32) -> (i32, i32) {
    %c0_i32 = arith.constant 0 : i32
    %c0_i32_0 = arith.constant 0 : i32
    return %arg0, %c0_i32 : i32, i32
  }
  func.func @transform_1(%arg0: i32) -> (i32, i32) {
    %c0_i32 = arith.constant 0 : i32
    %c0_i32_0 = arith.constant 0 : i32
    %c0_i32_1 = arith.constant 0 : i32
    return %c0_i32, %c0_i32_0 : i32, i32
  }
  func.func @transform_2(%arg0: i32) -> (i32, i32) {
    %c0_i32 = arith.constant 0 : i32
    %c0_i32_0 = arith.constant 0 : i32
    %c0_i32_1 = arith.constant 0 : i32
    return %c0_i32, %c0_i32_0 : i32, i32
  }
  func.func @transform_3(%arg0: i32) -> (i32, i32) {
    %c0_i32 = arith.constant 0 : i32
    %c0_i32_0 = arith.constant 0 : i32
    %c0_i32_1 = arith.constant 0 : i32
    return %c0_i32, %c0_i32_0 : i32, i32
  }
  func.func @transform_4(%arg0: i32) -> (i32, i32) {
    %c0_i32 = arith.constant 0 : i32
    %c0_i32_0 = arith.constant 0 : i32
    %c0_i32_1 = arith.constant 0 : i32
    return %c0_i32, %c0_i32_0 : i32, i32
  }
  func.func @transform_5(%arg0: i32) -> (i32, i32) {
    %c0_i32 = arith.constant 0 : i32
    %c0_i32_0 = arith.constant 0 : i32
    return %arg0, %c0_i32 : i32, i32
  }
}

</mosaic_0001>

<bundles_post_ra>
// kernel: tpu_custom_call.1
= control target key start
LH: loop header
LB: loop body
LE: loop exit
PB: predicated region body
PF: predicated region fallthrough
CT: control target
= control target key end

     0   :  { %10 = vsyncpa [#allocation3], 0  ;;  %s1026_s0 = inlined_call_operand.hbm [shape: bf16[8,32], index: 0, kind: input, shape index: {}]   ;;  %s1027_s1 = inlined_call_operand.hbm [shape: bf16[32,256], index: 1, kind: input, shape index: {}]   ;;  %s1028_s2 = inlined_call_operand.vmem [shape: f32[1,256], index: 2, kind: input, shape index: {}]   ;;  %s1029_s3 = inlined_call_operand.hbm [shape: bf16[256,512], index: 3, kind: input, shape index: {}]   ;;  %s1030_s4 = inlined_call_operand.vmem [shape: f32[1,512], index: 4, kind: input, shape index: {}]   ;;  %s1031_s5 = inlined_call_operand.hbm [shape: f32[8,512], index: 5, kind: output, shape index: {}]  }
   0x1   :  { %11 = vsyncpa [#allocation6], 0 }
   0x2   :  { %12 = vsyncpa [#allocation4], 0  ;;  %s933_s18 = smov [#allocation5]   ;;  %s839_s22 = scalar_lea.hbm %s1027_s1, 512 }
   0x3   :  { %s28_s19 = sshll.u32 %s933_s18, 4  ;;  %p840_p0 = scmp.ne.s32.totalorder %s1027_s1, %s839_s22  ;;  %s29_s19 = int_to_ptr.vmem [resolvable:$true] %s28_s19 }
   0x4   :  { %p843_p1 = scmp.lt.u32.totalorder %s839_s22, %s1027_s1 }
   0x6   :  { %p845_p2 = pnand %p843_p1, %p840_p0 }
   0x8   :  { %848 = shalt.err (!%p845_p2)
}
   0x9   :  { %s849_s27 = scalar_lea.vmem %s29_s19, 512  ;;  %p854_p4 = scmp.lt.s32.totalorder %s29_s19, %s29_s19 }
   0xa   :  { %p850_p3 = scmp.ne.s32.totalorder %s29_s19, %s849_s27  ;;  %p855_p5 = scmp.lt.s32.totalorder %s849_s27, %s849_s27 }
   0xc   :  { %p856_p6 = por %p855_p5, %p854_p4 }
   0xe   :  { %p857_p7 = pnand %p856_p6, %p850_p3 }
  0x10   :  { %860 = shalt.err (!%p857_p7)
}
  0x11   :  { %s934_s28 = smov 128   ;;  %s935_s29 = smov 8  }
  0x12   :  { %34 = dma.hbm_to_vmem [thread:$0]  %s1027_s1, 512, %s29_s19, [#allocation6], %s934_s28, %s934_s28, %s935_s29  }
  0x13   :  { %s936_s7 = smov [#allocation2]   ;;  %s937_s9 = smov [#allocation7]  }
  0x14   :  { %s19_s8 = sshll.u32 %s936_s7, 4  ;;  %s42_s10 = sshll.u32 %s937_s9, 4  ;;  %s20_s8 = int_to_ptr.vmem [resolvable:$true] %s19_s8  ;;  %s43_s10 = int_to_ptr.vmem [resolvable:$true] %s42_s10 }
  0x15   :  { %s861_s13 = scalar_lea.hbm %s1026_s0, 64 }
  0x16   :  { %p862_p8 = scmp.ne.s32.totalorder %s1026_s0, %s861_s13  ;;  %p865_p9 = scmp.lt.u32.totalorder %s861_s13, %s1026_s0 }
  0x18   :  { %p867_p10 = pnand %p865_p9, %p862_p8 }
  0x1a   :  { %870 = shalt.err (!%p867_p10)
}
  0x1b   :  { %s871_s1 = scalar_lea.vmem %s20_s8, 64  ;;  %p876_p12 = scmp.lt.s32.totalorder %s20_s8, %s20_s8 }
  0x1c   :  { %p872_p11 = scmp.ne.s32.totalorder %s20_s8, %s871_s1  ;;  %p877_p13 = scmp.lt.s32.totalorder %s871_s1, %s871_s1 }
  0x1e   :  { %p878_p0 = por %p877_p13, %p876_p12 }
  0x20   :  { %p879_p1 = pnand %p878_p0, %p872_p11 }
  0x22   :  { %882 = shalt.err (!%p879_p1)
}
  0x23   :  { %22 = dma.hbm_to_vmem [thread:$0]  %s1026_s0, 64, %s20_s8, [#allocation3]  }
  0x24   :  { %s883_s22 = scalar_lea.hbm %s1029_s3, 8192 }
  0x25   :  { %p884_p2 = scmp.ne.s32.totalorder %s1029_s3, %s883_s22  ;;  %p887_p3 = scmp.lt.u32.totalorder %s883_s22, %s1029_s3 }
  0x27   :  { %p889_p4 = pnand %p887_p3, %p884_p2 }
  0x29   :  { %892 = shalt.err (!%p889_p4)
}
  0x2a   :  { %s893_s27 = scalar_lea.vmem %s43_s10, 8192  ;;  %p898_p6 = scmp.lt.s32.totalorder %s43_s10, %s43_s10 }
  0x2b   :  { %p894_p5 = scmp.ne.s32.totalorder %s43_s10, %s893_s27  ;;  %p899_p7 = scmp.lt.s32.totalorder %s893_s27, %s893_s27 }
  0x2d   :  { %p900_p8 = por %p899_p7, %p898_p6 }
  0x2f   :  { %p901_p9 = pnand %p900_p8, %p894_p5 }
  0x31   :  { %904 = shalt.err (!%p901_p9)
}
  0x32   :  { %s938_s0 = smov 256   ;;  %s939_s28 = smov 16  }
  0x33   :  { %48 = dma.hbm_to_vmem [thread:$0]  %s1029_s3, 8192, %s43_s10, [#allocation6], %s938_s0, %s938_s0, %s939_s28  }
  0x34   :  { %927 = dma.done.wait [#allocation3], 64  }
  0x35   :  { %928 = vsyncadd [#allocation3], 4294967232 }
  0x36   :  { %929 = dma.done.wait [#allocation6], 8704  }
  0x37   :  { %930 = vsyncadd [#allocation6], 4294958592  ;;  %v940_v0 = vmov 0   ;;  %v733_v1 = vld [vmem:[#allocation5 + $0x4] ss:$8 sps:$4 sm:$0xff]   ;;  %vm98_vm0 = vcmask 261120  }
  0x38   :  { %134 = vmatprep.mubr.bf16.mxu0 %v940_v0  ;;  %v735_v2 = vld [vmem:[#allocation5] ss:$8 sps:$4 sm:$0xff]   ;;  %102 = vmatprep.subr.bf16.mxu0 %v733_v1  ;;  %v736_v3 = vld [vmem:[#allocation5 + $0x14] ss:$8 sps:$4 sm:$0xff]   ;;  %v738_v4 = vld [vmem:[#allocation5 + $0x10] ss:$8 sps:$4 sm:$0xff]  }
  0x39   :  { %103 = vmatpush1.bf16.msra.mxu0 %v735_v2  ;;  %v739_v5 = vld [vmem:[#allocation7 + $0x4] ss:$16 sps:$4 sm:$0xff]   ;;  %v61_v6 = vld [vmem:[#allocation2] sm:$0xf]  ;;  %v744_v8 = vld [vmem:[#allocation7] ss:$16 sps:$4 sm:$0xff]  }
  0x3a   :  { %104 = vmatprep.subr.bf16.mxu0 %v736_v3  ;;  %553 = vmatprep.subr.bf16.mxu1 %v739_v5  ;;  %v743_v7 = vld [vmem:[#allocation7 + $0xc] ss:$16 sps:$4 sm:$0xff]   ;;  %v745_v9 = vld [vmem:[#allocation7 + $0x24] ss:$16 sps:$4 sm:$0xff]   ;;  %v741_v10 = vld [vmem:[#allocation7 + $0x8] ss:$16 sps:$4 sm:$0xff]  }
  0x3b   :  { %554 = vmatpush1.bf16.msra.mxu1 %v744_v8  ;;  %v749_v11 = vld [vmem:[#allocation7 + $0x2c] ss:$16 sps:$4 sm:$0xff]   ;;  %v750_v12 = vld [vmem:[#allocation7 + $0x20] ss:$16 sps:$4 sm:$0xff]   ;;  %v751_v13 = vld [vmem:[#allocation7 + $0x44] ss:$16 sps:$4 sm:$0xff]  }
  0x3c   :  { %555 = vmatprep.subr.bf16.mxu1 %v745_v9  ;;  %v747_v14 = vld [vmem:[#allocation7 + $0x28] ss:$16 sps:$4 sm:$0xff]   ;;  %v755_v15 = vld [vmem:[#allocation7 + $0x4c] ss:$16 sps:$4 sm:$0xff]   ;;  %v756_v16 = vld [vmem:[#allocation7 + $0x40] ss:$16 sps:$4 sm:$0xff]  }
  0x3d   :  { %105 = vmatpush1.bf16.msra.mxu0 %v738_v4  ;;  %v757_v17 = vld [vmem:[#allocation7 + $0x64] ss:$16 sps:$4 sm:$0xff]   ;;  %v753_v18 = vld [vmem:[#allocation7 + $0x48] ss:$16 sps:$4 sm:$0xff]   ;;  %v761_v19 = vld [vmem:[#allocation7 + $0x6c] ss:$16 sps:$4 sm:$0xff]  }
  0x3e   :  { %594 = vmatprep.subr.bf16.mxu0 %v743_v7  ;;  %v762_v20 = vld [vmem:[#allocation7 + $0x60] ss:$16 sps:$4 sm:$0xff]   ;;  %v763_v21 = vld [vmem:[#allocation7 + $0x84] ss:$16 sps:$4 sm:$0xff]   ;;  %v759_v22 = vld [vmem:[#allocation7 + $0x68] ss:$16 sps:$4 sm:$0xff]  }
  0x3f   :  { %556 = vmatpush1.bf16.msra.mxu1 %v750_v12  ;;  %v767_v23 = vld [vmem:[#allocation7 + $0x8c] ss:$16 sps:$4 sm:$0xff]   ;;  %v768_v24 = vld [vmem:[#allocation7 + $0x80] ss:$16 sps:$4 sm:$0xff]   ;;  %v769_v25 = vld [vmem:[#allocation7 + $0xa4] ss:$16 sps:$4 sm:$0xff]  }
  0x40   :  { %659 = vmatmul.mubr.msk.bf16.vlgmr.msra.gmra.mrb[0].mxu0 %vm98_vm0, %v61_v6  ;;  %557 = vmatprep.subr.bf16.mxu1 %v751_v13  ;;  %v765_v26 = vld [vmem:[#allocation7 + $0x88] ss:$16 sps:$4 sm:$0xff]   ;;  %v773_v27 = vld [vmem:[#allocation7 + $0xac] ss:$16 sps:$4 sm:$0xff]   ;;  %v774_v28 = vld [vmem:[#allocation7 + $0xa0] ss:$16 sps:$4 sm:$0xff]   ;;  %v68_v6 = vlaneseq }
  0x41   :  { %595 = vmatpush1.bf16.msra.mxu0 %v741_v10  ;;  %v775_v29 = vld [vmem:[#allocation7 + $0xc4] ss:$16 sps:$4 sm:$0xff]   ;;  %v771_v30 = vld [vmem:[#allocation7 + $0xa8] ss:$16 sps:$4 sm:$0xff]   ;;  %v779_v31 = vld [vmem:[#allocation7 + $0xcc] ss:$16 sps:$4 sm:$0xff]  }
  0x42   :  { %596 = vmatprep.subr.bf16.mxu0 %v749_v11  ;;  %v780_v32 = vld [vmem:[#allocation7 + $0xc0] ss:$16 sps:$4 sm:$0xff]   ;;  %v781_v33 = vld [vmem:[#allocation7 + $0xe4] ss:$16 sps:$4 sm:$0xff]   ;;  %v777_v34 = vld [vmem:[#allocation7 + $0xc8] ss:$16 sps:$4 sm:$0xff]  }
  0x43   :  { %558 = vmatpush1.bf16.msra.mxu1 %v756_v16  ;;  %v785_v35 = vld [vmem:[#allocation7 + $0xec] ss:$16 sps:$4 sm:$0xff]   ;;  %v786_v36 = vld [vmem:[#allocation7 + $0xe0] ss:$16 sps:$4 sm:$0xff]   ;;  %v787_v37 = vld [vmem:[#allocation7 + $0x104] ss:$16 sps:$4 sm:$0xff]  }
  0x44   :  { %559 = vmatprep.subr.bf16.mxu1 %v757_v17  ;;  %v783_v38 = vld [vmem:[#allocation7 + $0xe8] ss:$16 sps:$4 sm:$0xff]   ;;  %v791_v39 = vld [vmem:[#allocation7 + $0x10c] ss:$16 sps:$4 sm:$0xff]   ;;  %v792_v40 = vld [vmem:[#allocation7 + $0x100] ss:$16 sps:$4 sm:$0xff]  }
  0x45   :  { %597 = vmatpush1.bf16.msra.mxu0 %v747_v14  ;;  %v793_v41 = vld [vmem:[#allocation7 + $0x124] ss:$16 sps:$4 sm:$0xff]   ;;  %v789_v42 = vld [vmem:[#allocation7 + $0x108] ss:$16 sps:$4 sm:$0xff]   ;;  %v798_v43 = vld [vmem:[#allocation7 + $0x120] ss:$16 sps:$4 sm:$0xff]  }
  0x46   :  { %598 = vmatprep.subr.bf16.mxu0 %v755_v15  ;;  %v797_v44 = vld [vmem:[#allocation7 + $0x12c] ss:$16 sps:$4 sm:$0xff]   ;;  %v799_v45 = vld [vmem:[#allocation7 + $0x144] ss:$16 sps:$4 sm:$0xff]   ;;  %v795_v46 = vld [vmem:[#allocation7 + $0x128] ss:$16 sps:$4 sm:$0xff]  }
  0x47   :  { %560 = vmatpush1.bf16.msra.mxu1 %v762_v20  ;;  %v804_v47 = vld [vmem:[#allocation7 + $0x140] ss:$16 sps:$4 sm:$0xff]   ;;  %v803_v48 = vld [vmem:[#allocation7 + $0x14c] ss:$16 sps:$4 sm:$0xff]   ;;  %v805_v49 = vld [vmem:[#allocation7 + $0x164] ss:$16 sps:$4 sm:$0xff]  }
  0x48   :  { %561 = vmatprep.subr.bf16.mxu1 %v763_v21  ;;  %v801_v50 = vld [vmem:[#allocation7 + $0x148] ss:$16 sps:$4 sm:$0xff]   ;;  %v810_v51 = vld [vmem:[#allocation7 + $0x160] ss:$16 sps:$4 sm:$0xff]   ;;  %v809_v52 = vld [vmem:[#allocation7 + $0x16c] ss:$16 sps:$4 sm:$0xff]  }
  0x49   :  { %599 = vmatpush1.bf16.msra.mxu0 %v753_v18  ;;  %v807_v53 = vld [vmem:[#allocation7 + $0x168] ss:$16 sps:$4 sm:$0xff]   ;;  %v811_v54 = vld [vmem:[#allocation7 + $0x184] ss:$16 sps:$4 sm:$0xff]   ;;  %v815_v55 = vld [vmem:[#allocation7 + $0x18c] ss:$16 sps:$4 sm:$0xff]  }
  0x4a   :  { %600 = vmatprep.subr.bf16.mxu0 %v761_v19  ;;  %v813_v56 = vld [vmem:[#allocation7 + $0x188] ss:$16 sps:$4 sm:$0xff]   ;;  %v816_v57 = vld [vmem:[#allocation7 + $0x180] ss:$16 sps:$4 sm:$0xff]   ;;  %v817_v58 = vld [vmem:[#allocation7 + $0x1a4] ss:$16 sps:$4 sm:$0xff]  }
  0x4b   :  { %562 = vmatpush1.bf16.msra.mxu1 %v768_v24  ;;  %v821_v59 = vld [vmem:[#allocation7 + $0x1ac] ss:$16 sps:$4 sm:$0xff]   ;;  %v819_v60 = vld [vmem:[#allocation7 + $0x1a8] ss:$16 sps:$4 sm:$0xff]   ;;  %v822_v61 = vld [vmem:[#allocation7 + $0x1a0] ss:$16 sps:$4 sm:$0xff]  }
  0x4c   :  { %563 = vmatprep.subr.bf16.mxu1 %v769_v25  ;;  %v823_v62 = vld [vmem:[#allocation7 + $0x1c4] ss:$16 sps:$4 sm:$0xff]   ;;  %v827_v63 = vld [vmem:[#allocation7 + $0x1cc] ss:$16 sps:$4 sm:$0xff]   ;;  %v825_v0 = vld [vmem:[#allocation7 + $0x1c8] ss:$16 sps:$4 sm:$0xff]  }
  0x4d   :  { %601 = vmatpush1.bf16.msra.mxu0 %v759_v22  ;;  %v828_v1 = vld [vmem:[#allocation7 + $0x1c0] ss:$16 sps:$4 sm:$0xff]   ;;  %v829_v2 = vld [vmem:[#allocation7 + $0x1e4] ss:$16 sps:$4 sm:$0xff]   ;;  %v833_v3 = vld [vmem:[#allocation7 + $0x1ec] ss:$16 sps:$4 sm:$0xff]  }
  0x4e   :  { %602 = vmatprep.subr.bf16.mxu0 %v767_v23  ;;  %v831_v4 = vld [vmem:[#allocation7 + $0x1e8] ss:$16 sps:$4 sm:$0xff]   ;;  %v834_v5 = vld [vmem:[#allocation7 + $0x1e0] ss:$16 sps:$4 sm:$0xff]   ;;  %v69_v7 = vshrl.u32 %v68_v6, 7  ;;  %s941_s8 = smov [#allocation8]  }
  0x4f   :  { %564 = vmatpush1.bf16.msra.mxu1 %v774_v28  ;;  %v66_v9 = vld [vmem:[%s1028_s2] sm:$0x3]  ;;  %s645_s9 = sshll.u32 %s941_s8, 4  ;;  %s646_s9 = int_to_ptr.vmem [resolvable:$true] %s645_s9 }
  0x50   :  { %565 = vmatprep.subr.bf16.mxu1 %v775_v29  ;;  %v70_v8 = vsub.s32 0, %v69_v7  ;;  %v74_v10 = vsub.s32 1, %v69_v7  ;;  %v223_v23 = vsub.s32 2, %v69_v7  ;;  %v211_v24 = vld [vmem:[%s1030_s4] sm:$0xf]  ;;  %v227_v25 = vsub.s32 3, %v69_v7  ;;  %p910_p11 = scmp.lt.s32.totalorder %s646_s9, %s646_s9 }
  0x51   :  { %603 = vmatpush1.bf16.msra.mxu0 %v765_v26  ;;  %s905_s4 = scalar_lea.vmem %s646_s9, 512 }
  0x52   :  { %604 = vmatprep.subr.bf16.mxu0 %v773_v27  ;;  %v71_v11 = vrot.slane %v66_v9, %v70_v8  ;;  %v75_v12 = vrot.slane %v66_v9, %v74_v10  ;;  %v216_v26 = vrot.slane %v211_v24, %v70_v8  ;;  %v224_v27 = vrot.slane %v211_v24, %v223_v23  ;;  %p906_p10 = scmp.ne.s32.totalorder %s646_s9, %s905_s4  ;;  %p911_p12 = scmp.lt.s32.totalorder %s905_s4, %s905_s4 }
  0x53   :  { %566 = vmatpush1.bf16.msra.mxu1 %v780_v32  ;;  %v220_v28 = vrot.slane %v211_v24, %v74_v10  ;;  %v228_v29 = vrot.slane %v211_v24, %v227_v25 }
  0x54   :  { %567 = vmatprep.subr.bf16.mxu1 %v781_v33  ;;  %p912_p13 = por %p911_p12, %p910_p11 }
  0x55   :  { %605 = vmatpush1.bf16.msra.mxu0 %v771_v30 }
  0x56   :  { %606 = vmatprep.subr.bf16.mxu0 %v779_v31  ;;  %p913_p0 = pnand %p912_p13, %p906_p10 }
  0x57   :  { %568 = vmatpush1.bf16.msra.mxu1 %v786_v36 }
  0x58   :  { %569 = vmatprep.subr.bf16.mxu1 %v787_v37 }
  0x59   :  { %607 = vmatpush1.bf16.msra.mxu0 %v777_v34 }
  0x5a   :  { %608 = vmatprep.subr.bf16.mxu0 %v785_v35 }
  0x5b   :  { %570 = vmatpush1.bf16.msra.mxu1 %v792_v40 }
  0x5c   :  { %571 = vmatprep.subr.bf16.mxu1 %v793_v41 }
  0x5d   :  { %609 = vmatpush1.bf16.msra.mxu0 %v783_v38 }
  0x5e   :  { %610 = vmatprep.subr.bf16.mxu0 %v791_v39 }
  0x5f   :  { %572 = vmatpush1.bf16.msra.mxu1 %v798_v43 }
  0x60   :  { %573 = vmatprep.subr.bf16.mxu1 %v799_v45 }
  0x61   :  { %611 = vmatpush1.bf16.msra.mxu0 %v789_v42 }
  0x62   :  { %612 = vmatprep.subr.bf16.mxu0 %v797_v44 }
  0x63   :  { %574 = vmatpush1.bf16.msra.mxu1 %v804_v47 }
  0x64   :  { %575 = vmatprep.subr.bf16.mxu1 %v805_v49 }
  0x65   :  { %613 = vmatpush1.bf16.msra.mxu0 %v795_v46 }
  0x66   :  { %614 = vmatprep.subr.bf16.mxu0 %v803_v48 }
  0x67   :  { %576 = vmatpush1.bf16.msra.mxu1 %v810_v51 }
  0x68   :  { %577 = vmatprep.subr.bf16.mxu1 %v811_v54 }
  0x69   :  { %615 = vmatpush1.bf16.msra.mxu0 %v801_v50 }
  0x6a   :  { %616 = vmatprep.subr.bf16.mxu0 %v809_v52 }
  0x6b   :  { %578 = vmatpush1.bf16.msra.mxu1 %v816_v57 }
  0x6c   :  { %579 = vmatprep.subr.bf16.mxu1 %v817_v58 }
  0x6d   :  { %617 = vmatpush1.bf16.msra.mxu0 %v807_v53 }
  0x6e   :  { %618 = vmatprep.subr.bf16.mxu0 %v815_v55 }
  0x6f   :  { %580 = vmatpush1.bf16.msra.mxu1 %v822_v61 }
  0x70   :  { %581 = vmatprep.subr.bf16.mxu1 %v823_v62 }
  0x71   :  { %619 = vmatpush1.bf16.msra.mxu0 %v813_v56 }
  0x72   :  { %620 = vmatprep.subr.bf16.mxu0 %v821_v59 }
  0x73   :  { %582 = vmatpush1.bf16.msra.mxu1 %v828_v1 }
  0x74   :  { %583 = vmatprep.subr.bf16.mxu1 %v829_v2 }
  0x75   :  { %621 = vmatpush1.bf16.msra.mxu0 %v819_v60 }
  0x76   :  { %622 = vmatprep.subr.bf16.mxu0 %v827_v63 }
  0x77   :  { %584 = vmatpush1.bf16.msra.mxu1 %v834_v5 }
  0x79   :  { %623 = vmatpush1.bf16.msra.mxu0 %v825_v0 }
  0x7a   :  { %624 = vmatprep.subr.bf16.mxu0 %v833_v3 }
  0x7d   :  { %625 = vmatpush1.bf16.msra.mxu0 %v831_v4 }
 0x113   :  { %v136_v13 = vpop.f32.mrb[0].mxu0 }
 0x114   :  { %v137_v14 = vadd.f32 %v136_v13, %v71_v11  ;;  %v138_v15 = vpop.f32.mrb[1].mxu0 }
 0x115   :  { %v139_v16 = vadd.f32 %v138_v15, %v75_v12  ;;  %v140_v17 = vpop.f32.mrb[2].mxu0 }
 0x116   :  { %835 = vtanh.f32 %v137_v14  ;;  %v141_v18 = vpop.f32.mrb[3].mxu0 }
 0x117   :  { %837 = vtanh.f32 %v139_v16 }
 0x120   :  { %v836_v19 = vpop.eup %835 }
 0x121   :  { %v838_v20 = vpop.eup %837  ;;  %v145_v22 = vpack.c.bf16 %v836_v19, %v836_v19 }
 0x122   :  { %v146_v21 = vpack.c.bf16 %v838_v20, %v838_v20 }
 0x124   :  { %585 = vmatprep.mubr.bf16.mxu1 %v146_v21  ;;  %626 = vmatprep.mubr.bf16.mxu0 %v146_v21 }
 0x125   :  { %586 = vmatmul.mubr.bf16.vlgmr.msra.gmra.mrb[0].mxu1 %v145_v22  ;;  %627 = vmatmul.mubr.bf16.vlgmr.msra.gmra.mrb[4].mxu0 %v145_v22 }
 0x1f8   :  { %v587_v30 = vpop.f32.mrb[0].mxu1  ;;  %v628_v31 = vpop.f32.mrb[4].mxu0 }
 0x1f9   :  { %v588_v32 = vadd.f32 %v587_v30, %v216_v26  ;;  %v629_v33 = vadd.f32 %v628_v31, %v224_v27  ;;  %v589_v34 = vpop.f32.mrb[1].mxu1  ;;  %v630_v35 = vpop.f32.mrb[5].mxu0 }
 0x1fa   :  { %v590_v36 = vadd.f32 %v589_v34, %v220_v28  ;;  %v631_v37 = vadd.f32 %v630_v35, %v228_v29  ;;  %v591_v38 = vpop.f32.mrb[2].mxu1  ;;  %v632_v39 = vpop.f32.mrb[6].mxu0 }
 0x1fb   :  { %635 = vst [vmem:[#allocation8] sm:$0xff] %v588_v32  ;;  %637 = vst [vmem:[#allocation8 + $0x10] sm:$0xff] %v629_v33  ;;  %v592_v40 = vpop.f32.mrb[3].mxu1  ;;  %v633_v41 = vpop.f32.mrb[7].mxu0 }
 0x1fc   :  { %636 = vst [vmem:[#allocation8 + $0x8] sm:$0xff] %v590_v36  ;;  %638 = vst [vmem:[#allocation8 + $0x18] sm:$0xff] %v631_v37 }
 0x1fd   :  { %916 = shalt.err (!%p913_p0)
}
 0x1fe   :  { %s917_s12 = scalar_lea.hbm %s1031_s5, 512 }
 0x1ff   :  { %p918_p1 = scmp.ne.s32.totalorder %s1031_s5, %s917_s12  ;;  %p921_p2 = scmp.lt.u32.totalorder %s917_s12, %s1031_s5 }
 0x201   :  { %p923_p3 = pnand %p921_p2, %p918_p1 }
 0x203   :  { %926 = shalt.err (!%p923_p3)
}
 0x204   :  { %648 = dma.vmem_to_hbm [thread:$0]  %s646_s9, 512, %s1031_s5, [#allocation4]  }
 0x205   :  { %931 = dma.done.wait [#allocation4], 512  }
 0x206   :  { %932 = vsyncadd [#allocation4], 4294966784 }
 0x207   :  { %652 = vsyncpa [#allocation3], 1 }
 0x208   :  { %653 = vsyncpa [#allocation6], 1 }
 0x209   :  { %654 = vsyncpa [#allocation4], 1 }

</bundles_post_ra>
